<compile_context>
chip_gen: v7x
topology: tpu7x:2x2x1
jax: 0.10.0
libtpu: 0.0.40
codegen_flags: <defaults>
</compile_context>

<pallas_src>
import jax
import jax.numpy as jnp
from jax.experimental import pallas as pl
from jax.experimental.pallas import tpu as pltpu


def _tpu_vmem_bytes():
    """Per-TensorCore VMEM capacity; conservative (v7x) fallback if unavailable."""
    try:
        return int(pltpu.get_tpu_info().vmem_capacity_bytes)
    except Exception:
        return 64 * 1024 * 1024


def _choose_tb(B, S, D, itemsize, vmem_bytes):
    """Pick the batch-tile size TB.

    Budget ~40% of VMEM for the double-buffered (S, TB, D) encoder tile; the
    remainder covers the full-tile f32 intermediates of the in-kernel
    contractions, the (small) q/mask/output blocks and compiler scratch.
    v7x (64 MiB) automatically gets ~half the TB of v5e/v6e (128 MiB).
    """
    budget = int(vmem_bytes * 0.40)
    per_row = 2 * S * D * itemsize            # double-buffered h bytes per batch row
    tb = max(1, budget // max(per_row, 1))
    if tb >= B:
        return B                              # whole batch per step: full-dim blocks
    if tb >= 128:
        return (tb // 128) * 128              # lane-dense (S, TB) attn/mask blocks
    # TODO(synk): very large S*D with a batch too big for VMEM would need a
    # sub-128 batch tile + batch-major attn output; not needed at these sizes.
    return min(B, 128)


def _attend(q_ref, h_ref, x_ref, a_ref, pad):
    """Shared body.  q:(TB,D)  h:(S,TB,D) time-major  pad:(S,TB) int32 or None."""
    h = h_ref[...]                            # native dtype -- no upcast of the big tile
    q = q_ref[...].astype(h.dtype)            # (TB, D)

    # attn_scores[s, t] = sum_d q[t, d] * h[s, t, d]
    # Broadcast-multiply over the time-major tile + lane reduction over D,
    # accumulated in f32 (for f32 inputs the casts are no-ops).
    scores = jnp.sum((h * q[None, :, :]).astype(jnp.float32), axis=-1)   # (S, TB)

    if pad is not None:
        # Finite "-inf": exp underflows to exactly 0 at padded slots, and a
        # fully padded row degrades to uniform weights instead of NaN.
        scores = jnp.where(pad != 0, jnp.float32(-1e30), scores)

    # Softmax over the source-length axis (sublane reduction), f32 state only.
    m = jnp.max(scores, axis=0, keepdims=True)            # (1, TB)
    e = jnp.exp(scores - m)                                # (S, TB)
    denom = jnp.sum(e, axis=0, keepdims=True)              # (1, TB)
    attn = e * pl.reciprocal(denom, approx=True)           # (S, TB), f32

    # context[t, d] = sum_s attn[s, t] * h[s, t, d]  (attn cast back to h dtype)
    ctx = jnp.sum((h * attn.astype(h.dtype)[:, :, None]).astype(jnp.float32),
                  axis=0)                                  # (TB, D)

    x_ref[...] = ctx.astype(x_ref.dtype)
    a_ref[...] = attn.astype(a_ref.dtype)                  # already (S, TB) layout


def _dot_attention_kernel_masked(q_ref, h_ref, m_ref, x_ref, a_ref):
    _attend(q_ref, h_ref, x_ref, a_ref, pad=m_ref[...])


def _dot_attention_kernel_nomask(q_ref, h_ref, x_ref, a_ref):
    _attend(q_ref, h_ref, x_ref, a_ref, pad=None)


def dot_attention_layer(input_bd, source_hids_sbd, encoder_padding_mask_bs=None):
    """JAX wrapper matching DotAttentionLayer.forward.

    input_bd:                (B, D) float
    source_hids_sbd:         (S, B, D) float (time-major, like fairseq)
    encoder_padding_mask_bs: (B, S) bool or None
    returns: (x: (B, D), attn: (S, B))
    """
    B, D = input_bd.shape
    S = source_hids_sbd.shape[0]
    itemsize = jnp.dtype(source_hids_sbd.dtype).itemsize

    vmem_cap = _tpu_vmem_bytes()
    TB = _choose_tb(B, S, D, itemsize, vmem_cap)
    nb = pl.cdiv(B, TB)

    in_specs = [
        pl.BlockSpec((TB, D), lambda b: (b, 0)),           # query, batch-major
        pl.BlockSpec((S, TB, D), lambda b: (0, b, 0)),      # encoder states, time-major
    ]
    args = [input_bd, source_hids_sbd]
    if encoder_padding_mask_bs is not None:
        # (S, B) int32 mask; tiny (no D factor) compared to the encoder states.
        mask_sb = encoder_padding_mask_bs.astype(jnp.int32).T
        in_specs.append(pl.BlockSpec((S, TB), lambda b: (0, b)))
        args.append(mask_sb)
        kernel = _dot_attention_kernel_masked
    else:
        kernel = _dot_attention_kernel_nomask               # no zero-mask DMA

    out_specs = (
        pl.BlockSpec((TB, D), lambda b: (b, 0)),             # context (B, D)
        pl.BlockSpec((S, TB), lambda b: (0, b)),             # attention already (S, B)
    )
    out_shape = (
        jax.ShapeDtypeStruct((B, D), input_bd.dtype),
        jax.ShapeDtypeStruct((S, B), input_bd.dtype),
    )

    ctx, attn_sb = pl.pallas_call(
        kernel,
        grid=(nb,),
        in_specs=in_specs,
        out_specs=out_specs,
        out_shape=out_shape,
        compiler_params=pltpu.CompilerParams(
            dimension_semantics=("parallel",),               # megacore-shardable on v7x
            vmem_limit_bytes=int(vmem_cap * 0.85),           # above 32 MiB scoped default
        ),
    )(*args)
    return ctx, attn_sb


def _reference(input_bd, source_hids_sbd, mask_bs):
    """Pure-JAX reference mirroring the PyTorch forward."""
    h = jnp.transpose(source_hids_sbd, (1, 0, 2))            # (B, S, D)
    scores = jnp.einsum("bd,bsd->bs", input_bd, h)
    if mask_bs is not None:
        scores = jnp.where(mask_bs, -jnp.inf, scores)
    attn = jax.nn.softmax(scores, axis=1)
    x = jnp.einsum("bs,bsd->bd", attn, h)
    return x, attn.T


if __name__ == "__main__":
    key = jax.random.PRNGKey(0)
    k1, k2, k3, k4 = jax.random.split(key, 4)

    # Tolerances account for the EUP approximate reciprocal in the softmax.
    ATOL = RTOL = 5e-3

    # Case 1: padded batch, tiny decoder-step shapes.
    B, S, D = 2, 8, 32
    inp = jax.random.normal(k1, (B, D), dtype=jnp.float32)
    src = jax.random.normal(k2, (S, B, D), dtype=jnp.float32)
    # batch 0: no padding; batch 1: last 3 source positions are padding
    pad_mask = jnp.array(
        [[False] * S,
         [False] * (S - 3) + [True] * 3],
        dtype=jnp.bool_,
    )

    x, attn = dot_attention_layer(inp, src, pad_mask)
    jax.block_until_ready((x, attn))
    x_ref, attn_ref = _reference(inp, src, pad_mask)
    assert x.shape == (B, D) and attn.shape == (S, B)
    assert jnp.allclose(x, x_ref, atol=ATOL, rtol=RTOL)
    assert jnp.allclose(attn, attn_ref, atol=ATOL, rtol=RTOL)

    # Case 2: no padding mask -> specialized kernel variant, slightly larger tile.
    B2, S2, D2 = 16, 64, 128
    inp2 = jax.random.normal(k3, (B2, D2), dtype=jnp.float32)
    src2 = jax.random.normal(k4, (S2, B2, D2), dtype=jnp.float32)
    x2, attn2 = dot_attention_layer(inp2, src2, None)
    jax.block_until_ready((x2, attn2))
    x2_ref, attn2_ref = _reference(inp2, src2, None)
    assert x2.shape == (B2, D2) and attn2.shape == (S2, B2)
    assert jnp.allclose(x2, x2_ref, atol=ATOL, rtol=RTOL)
    assert jnp.allclose(attn2, attn2_ref, atol=ATOL, rtol=RTOL)

    print("KERNEL_OK")
</pallas_src>

<mosaic_0001>
module attributes {stable_mosaic.version = 11 : i64} {
  func.func @_dot_attention_kernel_masked(%arg0: i32, %arg1: memref<2x32xf32, #tpu.memory_space<vmem>>, %arg2: memref<8x2x32xf32, #tpu.memory_space<vmem>>, %arg3: memref<8x2xi32, #tpu.memory_space<vmem>>, %arg4: memref<2x32xf32, #tpu.memory_space<vmem>>, %arg5: memref<8x2xf32, #tpu.memory_space<vmem>>) attributes {dimension_semantics = [#tpu.dimension_semantics<parallel>], iteration_bounds = array<i64: 1>, scalar_prefetch = 0 : i64, scratch_operands = 0 : i64, tpu.core_type = #tpu.core_type<tc>, window_params = [{transform_indices = @transform_0, window_bounds = array<i64: 2, 32>}, {transform_indices = @transform_1, window_bounds = array<i64: 8, 2, 32>}, {transform_indices = @transform_2, window_bounds = array<i64: 8, 2>}, {transform_indices = @transform_3, window_bounds = array<i64: 2, 32>}, {transform_indices = @transform_4, window_bounds = array<i64: 8, 2>}]} {
    %c0 = arith.constant 0 : index
    %c0_0 = arith.constant 0 : index
    %0 = vector.load %arg3[%c0, %c0_0] : memref<8x2xi32, #tpu.memory_space<vmem>>, vector<8x2xi32>
    %c0_1 = arith.constant 0 : index
    %c0_2 = arith.constant 0 : index
    %c0_3 = arith.constant 0 : index
    %1 = vector.load %arg2[%c0_1, %c0_2, %c0_3] : memref<8x2x32xf32, #tpu.memory_space<vmem>>, vector<8x2x32xf32>
    %c0_4 = arith.constant 0 : index
    %c0_5 = arith.constant 0 : index
    %2 = vector.load %arg1[%c0_4, %c0_5] : memref<2x32xf32, #tpu.memory_space<vmem>>, vector<2x32xf32>
    %3 = vector.shape_cast %2 : vector<2x32xf32> to vector<1x2x32xf32>
    %4 = vector.broadcast %3 : vector<1x2x32xf32> to vector<8x2x32xf32>
    %5 = arith.mulf %1, %4 : vector<8x2x32xf32>
    %cst = arith.constant dense<0.000000e+00> : vector<8x2xf32>
    %6 = vector.multi_reduction <add>, %5, %cst [2] : vector<8x2x32xf32> to vector<8x2xf32>
    %c0_i32 = arith.constant 0 : i32
    %7 = vector.broadcast %c0_i32 : i32 to vector<8x2xi32>
    %8 = arith.cmpi ne, %0, %7 : vector<8x2xi32>
    %cst_6 = arith.constant -1.000000e+30 : f32
    %9 = vector.broadcast %cst_6 : f32 to vector<8x2xf32>
    %10 = arith.select %8, %9, %6 : vector<8x2xi1>, vector<8x2xf32>
    %cst_7 = arith.constant dense<0xFF800000> : vector<2xf32>
    %11 = vector.multi_reduction <maximumf>, %10, %cst_7 [0] : vector<8x2xf32> to vector<2xf32>
    %12 = vector.shape_cast %11 : vector<2xf32> to vector<1x2xf32>
    %13 = vector.broadcast %12 : vector<1x2xf32> to vector<8x2xf32>
    %14 = arith.subf %10, %13 : vector<8x2xf32>
    %15 = math.exp %14 : vector<8x2xf32>
    %cst_8 = arith.constant dense<0.000000e+00> : vector<2xf32>
    %16 = vector.multi_reduction <add>, %15, %cst_8 [0] : vector<8x2xf32> to vector<2xf32>
    %17 = vector.shape_cast %16 : vector<2xf32> to vector<1x2xf32>
    %18 = tpu.reciprocal %17 {approx = true} : vector<1x2xf32> -> vector<1x2xf32>
    %19 = vector.broadcast %18 : vector<1x2xf32> to vector<8x2xf32>
    %20 = arith.mulf %15, %19 : vector<8x2xf32>
    %21 = vector.shape_cast %20 : vector<8x2xf32> to vector<8x2x1xf32>
    %22 = vector.broadcast %21 : vector<8x2x1xf32> to vector<8x2x32xf32>
    %23 = arith.mulf %1, %22 : vector<8x2x32xf32>
    %cst_9 = arith.constant dense<0.000000e+00> : vector<2x32xf32>
    %24 = vector.multi_reduction <add>, %23, %cst_9 [0] : vector<8x2x32xf32> to vector<2x32xf32>
    %c0_10 = arith.constant 0 : index
    %c0_11 = arith.constant 0 : index
    %25 = vector.load %arg4[%c0_10, %c0_11] : memref<2x32xf32, #tpu.memory_space<vmem>>, vector<2x32xf32>
    tpu.vector_store %arg4[%c0_10, %c0_11], %24 {strides = array<i32>} : memref<2x32xf32, #tpu.memory_space<vmem>>, vector<2x32xf32>,
    %c0_12 = arith.constant 0 : index
    %c0_13 = arith.constant 0 : index
    %26 = vector.load %arg5[%c0_12, %c0_13] : memref<8x2xf32, #tpu.memory_space<vmem>>, vector<8x2xf32>
    tpu.vector_store %arg5[%c0_12, %c0_13], %20 {strides = array<i32>} : memref<8x2xf32, #tpu.memory_space<vmem>>, vector<8x2xf32>,
    return
  }
  func.func @transform_0(%arg0: i32) -> (i32, i32) {
    %c0_i32 = arith.constant 0 : i32
    %c0_i32_0 = arith.constant 0 : i32
    return %arg0, %c0_i32 : i32, i32
  }
  func.func @transform_1(%arg0: i32) -> (i32, i32, i32) {
    %c0_i32 = arith.constant 0 : i32
    %c0_i32_0 = arith.constant 0 : i32
    %c0_i32_1 = arith.constant 0 : i32
    return %c0_i32, %arg0, %c0_i32_0 : i32, i32, i32
  }
  func.func @transform_2(%arg0: i32) -> (i32, i32) {
    %c0_i32 = arith.constant 0 : i32
    %c0_i32_0 = arith.constant 0 : i32
    return %c0_i32, %arg0 : i32, i32
  }
  func.func @transform_3(%arg0: i32) -> (i32, i32) {
    %c0_i32 = arith.constant 0 : i32
    %c0_i32_0 = arith.constant 0 : i32
    return %arg0, %c0_i32 : i32, i32
  }
  func.func @transform_4(%arg0: i32) -> (i32, i32) {
    %c0_i32 = arith.constant 0 : i32
    %c0_i32_0 = arith.constant 0 : i32
    return %c0_i32, %arg0 : i32, i32
  }
}

</mosaic_0001>

<bundles_post_ra>
// kernel: tpu_custom_call.1
= control target key start
LH: loop header
LB: loop body
LE: loop exit
PB: predicated region body
PF: predicated region fallthrough
CT: control target
= control target key end

     0   :  { %10 = vsyncpa [#allocation3], 0  ;;  %s434_s0 = inlined_call_operand.vmem [shape: f32[2,32], index: 0, kind: input, shape index: {}]   ;;  %s435_s1 = inlined_call_operand.hbm [shape: f32[8,2,32], index: 1, kind: input, shape index: {}]   ;;  %s436_s2 = inlined_call_operand.vmem [shape: s32[8,2], index: 2, kind: input, shape index: {}]   ;;  %s437_s3 = inlined_call_operand.hbm [shape: f32[2,32], index: 3, kind: output, shape index: {0}]   ;;  %s438_s4 = inlined_call_operand.vmem [shape: f32[8,2], index: 4, kind: output, shape index: {1}]  }
   0x1   :  { %11 = vsyncpa [#allocation4], 0  ;;  %s309_s15 = smov [#allocation2]   ;;  %s261_s19 = scalar_lea.hbm %s435_s1, 256 }
   0x2   :  { %s19_s16 = sshll.u32 %s309_s15, 4  ;;  %p262_p0 = scmp.ne.s32.totalorder %s435_s1, %s261_s19  ;;  %s20_s16 = int_to_ptr.vmem [resolvable:$true] %s19_s16 }
   0x3   :  { %p265_p1 = scmp.lt.u32.totalorder %s261_s19, %s435_s1 }
   0x5   :  { %p267_p2 = pnand %p265_p1, %p262_p0 }
   0x7   :  { %270 = shalt.err (!%p267_p2)
}
   0x8   :  { %s271_s24 = scalar_lea.vmem %s20_s16, 256  ;;  %p276_p4 = scmp.lt.s32.totalorder %s20_s16, %s20_s16 }
   0x9   :  { %p272_p3 = scmp.ne.s32.totalorder %s20_s16, %s271_s24  ;;  %p277_p5 = scmp.lt.s32.totalorder %s271_s24, %s271_s24 }
   0xb   :  { %p278_p6 = por %p277_p5, %p276_p4 }
   0xd   :  { %p279_p7 = pnand %p278_p6, %p272_p3 }
   0xf   :  { %282 = shalt.err (!%p279_p7)
}
  0x10   :  { %s310_s25 = smov 32   ;;  %s311_s26 = smov 2  }
  0x11   :  { %25 = dma.hbm_to_vmem [thread:$0]  %s435_s1, 256, %s20_s16, [#allocation3], %s310_s25, %s310_s25, %s311_s26  }
  0x12   :  { %305 = dma.done.wait [#allocation3], 256  }
  0x13   :  { %306 = vsyncadd [#allocation3], 4294967040  ;;  %vm49_vm0 = vcmask 254976   ;;  %v350_v0 = vld [vmem:[#allocation2] sm:$0x3]  ;;  %v83_v25 = vlaneseq  ;;  %vm117_vm1 = vcmask 1041409  }
  0x14   :  { %v40_v1 = vld [vmem:[%s434_s0] sm:$0x3]  ;;  %v355_v2 = vld [vmem:[#allocation2 + $0x4] sm:$0x3]  ;;  %v359_v5 = vld [vmem:[#allocation2 + $0x2] sm:$0x3] }
  0x15   :  { %v41_v3 = vmul.f32 %v40_v1, %v350_v0  ;;  %v43_v4 = vmul.f32 %v40_v1, %v355_v2  ;;  %v361_v6 = vld [vmem:[#allocation2 + $0x6] sm:$0x3]  ;;  %v42_v7 = vmul.f32 %v40_v1, %v359_v5  ;;  %v365_v9 = vld [vmem:[#allocation2 + $0x8] sm:$0x3]  ;;  %v367_v10 = vld [vmem:[#allocation2 + $0xa] sm:$0x3] }
  0x16   :  { %v44_v8 = vmul.f32 %v40_v1, %v361_v6  ;;  %v45_v15 = vmul.f32 %v40_v1, %v365_v9  ;;  %v46_v16 = vmul.f32 %v40_v1, %v367_v10  ;;  %v375_v17 = vld [vmem:[#allocation2 + $0xc] sm:$0x3]  ;;  %v377_v18 = vld [vmem:[#allocation2 + $0xe] sm:$0x3]  ;;  %v84_v26 = vand.u32 127, %v83_v25  ;;  %v31_v45 = vld [vmem:[%s436_s2] sm:$0xff] }
  0x17   :  { %v50_v11 = vsel %vm49_vm0, %v41_v3, 0.0  ;;  %v56_v12 = vsel %vm49_vm0, %v43_v4, 0.0  ;;  %v53_v13 = vsel %vm49_vm0, %v42_v7, 0.0  ;;  %v47_v21 = vmul.f32 %v40_v1, %v375_v17 }
  0x18   :  { %51 = vadd.xlane.f32.xlu0 %v50_v11  ;;  %57 = vadd.xlane.f32.xlu1 %v56_v12  ;;  %v59_v14 = vsel %vm49_vm0, %v44_v8, 0.0  ;;  %v62_v19 = vsel %vm49_vm0, %v45_v15, 0.0  ;;  %v65_v20 = vsel %vm49_vm0, %v46_v16, 0.0  ;;  %v48_v22 = vmul.f32 %v40_v1, %v377_v18 }
  0x19   :  { %v68_v23 = vsel %vm49_vm0, %v47_v21, 0.0  ;;  %v385_v27 = vshrl.u32 %v83_v25, 7  ;;  %vm119_vm2 = vcmask 1042434   ;;  %vm121_vm3 = vcmask 1043459  }
  0x1a   :  { %v71_v24 = vsel %vm49_vm0, %v48_v22, 0.0  ;;  %vm123_vm4 = vcmask 1044484   ;;  %vm125_vm5 = vcmask 1045509   ;;  %vm127_vm6 = vcmask 1046534  }
  0x1b   :  { %v87_v30 = vsub.s32 %v84_v26, %v385_v27  ;;  %vm129_vm7 = vcmask 1047559   ;;  %vm74_vm8 = vcmp.ne.s32.totalorder %v31_v45, 0  ;;  %vm133_vm9 = vcmask 15360  }
  0x1c   :  { %54 = vadd.xlane.f32.xlu0 %v53_v13  ;;  %60 = vadd.xlane.f32.xlu1 %v59_v14  ;;  %v162_v13 = vsub.s32 1, %v385_v27  ;;  %v155_v14 = vsub.s32 0, %v385_v27  ;;  %v169_v21 = vsub.s32 2, %v385_v27  ;;  %v183_v22 = vsub.s32 4, %v385_v27 }
  0x1d   :  { %v176_v25 = vsub.s32 3, %v385_v27  ;;  %v197_v26 = vsub.s32 6, %v385_v27 }
  0x20   :  { %63 = vadd.xlane.f32.xlu0 %v62_v19  ;;  %66 = vadd.xlane.f32.xlu1 %v65_v20 }
  0x24   :  { %69 = vadd.xlane.f32.xlu0 %v68_v23  ;;  %72 = vadd.xlane.f32.xlu1 %v71_v24 }
  0xa5   :  { %v52_v28 = vpop.xlane.xlu0 %51  ;;  %v58_v29 = vpop.xlane.xlu1 %57 }
  0xa6   :  { %v88_v33 = vrot.slane %v52_v28, %v87_v30  ;;  %v96_v36 = vrot.slane %v58_v29, %v87_v30 }
  0xa9   :  { %v55_v31 = vpop.xlane.xlu0 %54  ;;  %v61_v32 = vpop.xlane.xlu1 %60 }
  0xaa   :  { %v92_v34 = vrot.slane %v55_v31, %v87_v30  ;;  %v100_v35 = vrot.slane %v61_v32, %v87_v30  ;;  %v204_v32 = vsub.s32 7, %v385_v27 }
  0xac   :  { %v118_v37 = vsel %vm117_vm1, %v92_v34, %v88_v33 }
  0xad   :  { %v120_v38 = vsel %vm119_vm2, %v96_v36, %v118_v37  ;;  %v64_v39 = vpop.xlane.xlu0 %63  ;;  %v67_v40 = vpop.xlane.xlu1 %66 }
  0xae   :  { %v122_v41 = vsel %vm121_vm3, %v100_v35, %v120_v38  ;;  %v104_v42 = vrot.slane %v64_v39, %v87_v30  ;;  %v108_v43 = vrot.slane %v67_v40, %v87_v30 }
  0xb0   :  { %v124_v44 = vsel %vm123_vm4, %v104_v42, %v122_v41 }
  0xb1   :  { %v70_v46 = vpop.xlane.xlu0 %69  ;;  %v73_v47 = vpop.xlane.xlu1 %72  ;;  %v126_v50 = vsel %vm125_vm5, %v108_v43, %v124_v44 }
  0xb2   :  { %v112_v48 = vrot.slane %v70_v46, %v87_v30  ;;  %v116_v49 = vrot.slane %v73_v47, %v87_v30  ;;  %v190_v30 = vsub.s32 5, %v385_v27 }
  0xb4   :  { %v128_v51 = vsel %vm127_vm6, %v112_v48, %v126_v50 }
  0xb5   :  { %v130_v52 = vsel %vm129_vm7, %v116_v49, %v128_v51 }
  0xb6   :  { %v132_v53 = vsel %vm74_vm8, -1e+30, %v130_v52 }
  0xb7   :  { %v134_v54 = vsel %vm133_vm9, %v132_v53, -inf }
  0xb8   :  { %v135_v55 = vrot.slane %v134_v54, 4 }
  0xba   :  { %v136_v56 = vmax.f32 %v134_v54, %v135_v55 }
  0xbc   :  { %v137_v57 = vrot.slane %v136_v56, 2 }
  0xbe   :  { %v138_v58 = vmax.f32 %v136_v56, %v137_v57 }
  0xc0   :  { %v139_v59 = vrot.slane %v138_v58, 1 }
  0xc2   :  { %v140_v60 = vmax.f32 %v138_v58, %v139_v59 }
  0xc4   :  { %v141_v61 = vsub.f32 %v132_v53, %v140_v60 }
  0xc6   :  { %v142_v62 = vmul.f32 1.442695, %v141_v61 }
  0xc8   :  { %257 = vpow2.f32 %v142_v62 }
  0xd2   :  { %v258_v63 = vpop.eup %257 }
  0xd3   :  { %v144_v1 = vsel %vm133_vm9, %v258_v63, 0.0 }
  0xd4   :  { %v145_v3 = vrot.slane %v144_v1, 4 }
  0xd6   :  { %v146_v4 = vadd.f32 %v145_v3, %v144_v1 }
  0xd8   :  { %v147_v7 = vrot.slane %v146_v4, 2 }
  0xda   :  { %v148_v8 = vadd.f32 %v147_v7, %v146_v4 }
  0xdc   :  { %v149_v11 = vrot.slane %v148_v8, 1 }
  0xde   :  { %v150_v12 = vadd.f32 %v149_v11, %v148_v8 }
  0xe0   :  { %259 = vrcp.f32 %v150_v12 }
  0xea   :  { %v260_v15 = vpop.eup %259 }
  0xeb   :  { %v152_v16 = vmul.f32 %v260_v15, %v258_v63 }
  0xed   :  { %233 = vst.msk [vmem:[%s438_s4] sm:$0xff] %vm133_vm9, %v152_v16  ;;  %v163_v19 = vrot.slane %v152_v16, %v162_v13  ;;  %v156_v20 = vrot.slane %v152_v16, %v155_v14  ;;  %v170_v23 = vrot.slane %v152_v16, %v169_v21  ;;  %v184_v24 = vrot.slane %v152_v16, %v183_v22  ;;  %s312_s4 = smov [#allocation5]  }
  0xee   :  { %v177_v28 = vrot.slane %v152_v16, %v176_v25  ;;  %v198_v29 = vrot.slane %v152_v16, %v197_v26  ;;  %v191_v31 = vrot.slane %v152_v16, %v190_v30  ;;  %v205_v33 = vrot.slane %v152_v16, %v204_v32  ;;  %s240_s6 = sshll.u32 %s312_s4, 4  ;;  %s241_s6 = int_to_ptr.vmem [resolvable:$true] %s240_s6 }
  0xef   :  { %165 = vbcast.lane.b32.xlu1 %v163_v19, 256  ;;  %158 = vbcast.lane.b32.xlu0 %v156_v20, 256  ;;  %s283_s7 = scalar_lea.vmem %s241_s6, 32  ;;  %p288_p9 = scmp.lt.s32.totalorder %s241_s6, %s241_s6 }
  0xf0   :  { %p284_p8 = scmp.ne.s32.totalorder %s241_s6, %s283_s7  ;;  %p289_p10 = scmp.lt.s32.totalorder %s283_s7, %s283_s7 }
  0xf2   :  { %p290_p11 = por %p289_p10, %p288_p9 }
  0xf3   :  { %172 = vbcast.lane.b32.xlu1 %v170_v23, 256  ;;  %186 = vbcast.lane.b32.xlu0 %v184_v24, 256 }
  0xf4   :  { %p291_p12 = pnand %p290_p11, %p284_p8 }
  0xf7   :  { %179 = vbcast.lane.b32.xlu1 %v177_v28, 256  ;;  %200 = vbcast.lane.b32.xlu0 %v198_v29, 256 }
  0xfb   :  { %193 = vbcast.lane.b32.xlu1 %v191_v31, 256 }
  0xff   :  { %207 = vbcast.lane.b32.xlu1 %v205_v33, 256 }
 0x161   :  { %v166_v34 = vpop.permute.xlu1 %165  ;;  %v159_v35 = vpop.permute.xlu0 %158 }
 0x162   :  { %v210_v36 = vmul.f32 %v166_v34, %v359_v5  ;;  %v209_v37 = vmul.f32 %v159_v35, %v350_v0 }
 0x164   :  { %v218_v40 = vsel %vm49_vm0, %v210_v36, 0.0  ;;  %v217_v41 = vsel %vm49_vm0, %v209_v37, 0.0 }
 0x165   :  { %v173_v38 = vpop.permute.xlu1 %172  ;;  %v187_v39 = vpop.permute.xlu0 %186  ;;  %v219_v27 = vadd.f32 %v218_v40, %v217_v41 }
 0x166   :  { %v211_v42 = vmul.f32 %v173_v38, %v355_v2  ;;  %v213_v45 = vmul.f32 %v187_v39, %v365_v9 }
 0x168   :  { %v220_v43 = vsel %vm49_vm0, %v211_v42, 0.0  ;;  %v224_v50 = vsel %vm49_vm0, %v213_v45, 0.0 }
 0x169   :  { %v180_v44 = vpop.permute.xlu1 %179  ;;  %v221_v47 = vadd.f32 %v220_v43, %v219_v27  ;;  %v201_v5 = vpop.permute.xlu0 %200 }
 0x16a   :  { %v212_v46 = vmul.f32 %v180_v44, %v361_v6  ;;  %v215_v51 = vmul.f32 %v201_v5, %v375_v17 }
 0x16c   :  { %v222_v0 = vsel %vm49_vm0, %v212_v46, 0.0  ;;  %v228_v9 = vsel %vm49_vm0, %v215_v51, 0.0 }
 0x16d   :  { %v223_v48 = vadd.f32 %v222_v0, %v221_v47  ;;  %v194_v49 = vpop.permute.xlu1 %193 }
 0x16e   :  { %v214_v2 = vmul.f32 %v194_v49, %v367_v10 }
 0x16f   :  { %v225_v52 = vadd.f32 %v224_v50, %v223_v48 }
 0x170   :  { %v226_v53 = vsel %vm49_vm0, %v214_v2, 0.0 }
 0x171   :  { %v227_v54 = vadd.f32 %v226_v53, %v225_v52  ;;  %v208_v55 = vpop.permute.xlu1 %207 }
 0x172   :  { %v216_v6 = vmul.f32 %v208_v55, %v377_v18 }
 0x173   :  { %v229_v56 = vadd.f32 %v228_v9, %v227_v54 }
 0x174   :  { %v230_v57 = vsel %vm49_vm0, %v216_v6, 0.0 }
 0x175   :  { %v231_v58 = vadd.f32 %v230_v57, %v229_v56 }
 0x177   :  { %232 = vst.msk [vmem:[#allocation5] sm:$0x3] %vm49_vm0, %v231_v58 }
 0x178   :  { %294 = shalt.err (!%p291_p12)
}
 0x179   :  { %s295_s10 = scalar_lea.hbm %s437_s3, 32 }
 0x17a   :  { %p296_p13 = scmp.ne.s32.totalorder %s437_s3, %s295_s10  ;;  %p299_p0 = scmp.lt.u32.totalorder %s295_s10, %s437_s3 }
 0x17c   :  { %p301_p1 = pnand %p299_p0, %p296_p13 }
 0x17e   :  { %304 = shalt.err (!%p301_p1)
}
 0x17f   :  { %243 = dma.vmem_to_hbm [thread:$0]  %s241_s6, 32, %s437_s3, [#allocation4]  }
 0x180   :  { %307 = dma.done.wait [#allocation4], 32  }
 0x181   :  { %308 = vsyncadd [#allocation4], 4294967264 }
 0x182   :  { %251 = vsyncpa [#allocation3], 1 }
 0x183   :  { %252 = vsyncpa [#allocation4], 1 }

</bundles_post_ra>
